<compile_context>
chip_gen: v7x
topology: tpu7x:2x2x1
jax: 0.10.0
libtpu: 0.0.40
codegen_flags: <defaults>
</compile_context>

<pallas_src>
import functools

import jax
import jax.numpy as jnp
from jax.experimental import pallas as pl
from jax.experimental.pallas import tpu as pltpu

BN_EPS = 1e-5
LANE = 128
SUBLANE = 8


def _round_up(n, m):
    return ((n + m - 1) // m) * m


def cancer_classifier_kernel(xt_ref, w1_ref, b1_ref, w2_ref, b2_ref, o_ref):
    """One batch tile of sigmoid(fc2(relu(bn(fc1(x))))) in (feature, batch) layout.

    xt_ref: (In, TILE_B)  bf16  x^T tile (batch on lanes)
    w1_ref: (Hp, In)      bf16  fc1 weight with eval-mode BatchNorm folded in
    b1_ref: (Hp, 1)       f32   fc1 bias with BatchNorm folded in
    w2_ref: (Op, Hp)      bf16  fc2 weight (PyTorch (out,in) layout, rows padded 1->8)
    b2_ref: (1,)          f32   fc2 bias scalar (SMEM)
    o_ref : (1, TILE_B)   f32   lane-dense sigmoid outputs for this tile
    """
    # fc1 (+ folded BN): (Hp, In) x (In, TILE_B) -> (Hp, TILE_B), f32 accumulation.
    h = jnp.dot(w1_ref[...], xt_ref[...], preferred_element_type=jnp.float32)
    # Epilogue strictly f32 (v5e has no bf16 VPU/EUP).
    h = jnp.maximum(h + b1_ref[...], 0.0)  # bias + ReLU
    # Dropout(p=0.2) is identity under eval()/predict().
    # TODO(synk): training-mode dropout (pltpu.prng_random_bits mask) not emitted here.

    # fc2: (Op, Hp) x (Hp, TILE_B) -> (Op, TILE_B); batch stays on lanes, no XLU transpose.
    z = jnp.dot(w2_ref[...], h.astype(jnp.bfloat16), preferred_element_type=jnp.float32)
    # Only row 0 is real; sigmoid lowers to the EUP slot (effectively free).
    o_ref[...] = jax.nn.sigmoid(z[0:1, :] + b2_ref[0])


def prepare_params(params):
    """Fold eval-mode BatchNorm into fc1, pad hidden/out dims, cast MXU operands to bf16.
    Done once, outside the kernel."""
    w1 = params["w1"]                      # (H, In)  PyTorch fc1.weight
    b1 = params["b1"]                      # (H,)
    gamma, beta = params["gamma"], params["beta"]
    mean, var = params["running_mean"], params["running_var"]
    w2 = params["w2"]                      # (O, H)   PyTorch fc2.weight
    b2 = params["b2"]                      # (O,)

    out_size, hidden = w2.shape
    assert out_size == 1, "kernel assumes a single sigmoid output (binary classifier)"
    # TODO(synk): output_size > 1 would need a multi-row output block + VMEM bias column.

    scale = gamma * jax.lax.rsqrt(var + BN_EPS)                 # (H,)
    w1f = w1 * scale[:, None]                                   # (H, In)  BN folded into fc1
    b1f = (b1 - mean) * scale + beta                            # (H,)

    hp = _round_up(hidden, LANE)                                # pad hidden
    op = _round_up(out_size, SUBLANE)                           # pad out rows to a sublane set
    w1f = jnp.pad(w1f, ((0, hp - hidden), (0, 0)))              # (Hp, In)
    b1f = jnp.pad(b1f, (0, hp - hidden)).reshape(hp, 1)         # (Hp, 1)
    w2p = jnp.pad(w2, ((0, op - out_size), (0, hp - hidden)))   # (Op, Hp), zero pad -> 0 contrib

    return {
        "w1": w1f.astype(jnp.bfloat16),                         # (Hp, In)
        "b1": b1f.astype(jnp.float32),                          # (Hp, 1)
        "w2": w2p.astype(jnp.bfloat16),                         # (Op, Hp)
        "b2": b2.reshape(1).astype(jnp.float32),                # (1,) -> SMEM scalar
    }


@functools.partial(jax.jit, static_argnames=("tile_b",))
def cancer_classifier_forward(x, prep, tile_b=2048):
    """x: (B, input_size) float.  prep: output of prepare_params.  Returns (B, 1) f32."""
    B, in_size = x.shape
    hp = prep["w1"].shape[0]
    op = prep["w2"].shape[0]

    # Tile selection: always a multiple of 128 (lane-dense, unmasked stores), as few
    # grid steps as VMEM allows, minimal batch padding.
    bp128 = _round_up(B, LANE)
    tile_req = max(LANE, min(_round_up(tile_b, LANE), bp128))
    grid_n = pl.cdiv(bp128, tile_req)
    if grid_n > 1 and grid_n % 2 == 1:
        grid_n += 1  # even tile count keeps v7x's 2 TensorCores balanced; ~free on 1-TC parts
    tb = _round_up(pl.cdiv(bp128, grid_n), LANE)
    bp = grid_n * tb

    # One fused wrapper op: cast to bf16 (halves the dominant input HBM stream into the
    # kernel), transpose to (In, B) so batch rides the lane axis end-to-end, and pad
    # only the small (< tile) tail.
    xt = x.astype(jnp.bfloat16).T
    if bp != B:
        xt = jnp.pad(xt, ((0, 0), (0, bp - B)))

    out = pl.pallas_call(
        cancer_classifier_kernel,
        out_shape=jax.ShapeDtypeStruct((1, bp), jnp.float32),
        grid=(grid_n,),
        in_specs=[
            # x^T batch tile
            pl.BlockSpec((in_size, tb), lambda i: (0, i)),
            # weights/biases: constant block index -> DMA'd once, VMEM-resident across grid
            pl.BlockSpec((hp, in_size), lambda i: (0, 0)),
            pl.BlockSpec((hp, 1), lambda i: (0, 0)),
            pl.BlockSpec((op, hp), lambda i: (0, 0)),
            # fc2 bias scalar: 1-D SMEM (a few bytes, no padded 2-D SMEM block / VMEM DMA)
            pl.BlockSpec((1,), lambda i: (0,), memory_space=pltpu.SMEM),
        ],
        out_specs=pl.BlockSpec((1, tb), lambda i: (0, i)),
        compiler_params=pltpu.CompilerParams(
            dimension_semantics=("parallel",),  # lets v7x shard the batch grid over 2 TCs
        ),
    )(xt, prep["w1"], prep["b1"], prep["w2"], prep["b2"])

    # Row 0 holds the real outputs; this slice reads only B floats.
    return out[0, :B].reshape(B, 1)


def init_params(key, input_size, hidden_size, output_size):
    """Deterministic synthetic parameters in PyTorch layouts (fc.weight = (out, in))."""
    k1, k2, k3, k4 = jax.random.split(key, 4)
    s1 = 1.0 / jnp.sqrt(input_size)
    s2 = 1.0 / jnp.sqrt(hidden_size)
    return {
        "w1": jax.random.uniform(k1, (hidden_size, input_size), jnp.float32, -s1, s1),
        "b1": jax.random.uniform(k2, (hidden_size,), jnp.float32, -s1, s1),
        "gamma": jnp.ones((hidden_size,), jnp.float32),
        "beta": jnp.zeros((hidden_size,), jnp.float32),
        # non-trivial running stats so the BN fold is actually exercised
        "running_mean": 0.1 * jnp.arange(hidden_size, dtype=jnp.float32) / hidden_size,
        "running_var": 1.0 + 0.5 * jnp.arange(hidden_size, dtype=jnp.float32) / hidden_size,
        "w2": jax.random.uniform(k3, (output_size, hidden_size), jnp.float32, -s2, s2),
        "b2": jax.random.uniform(k4, (output_size,), jnp.float32, -s2, s2),
    }


if __name__ == "__main__":
    INPUT_SIZE = 16
    HIDDEN_SIZE = 32
    OUTPUT_SIZE = 1
    BATCH = 256  # -> a single 256-wide batch tile (grid of 1), per review guidance

    key = jax.random.PRNGKey(0)
    kx, kp = jax.random.split(key)
    x = jax.random.normal(kx, (BATCH, INPUT_SIZE), jnp.float32)
    params = init_params(kp, INPUT_SIZE, HIDDEN_SIZE, OUTPUT_SIZE)
    prep = prepare_params(params)

    out = cancer_classifier_forward(x, prep)
    out = jax.block_until_ready(out)

    # Pure-f32 JAX reference with eval-mode BatchNorm semantics (PyTorch predict()).
    h = x @ params["w1"].T + params["b1"]
    h = (h - params["running_mean"]) * jax.lax.rsqrt(params["running_var"] + BN_EPS) \
        * params["gamma"] + params["beta"]
    h = jnp.maximum(h, 0.0)
    ref = jax.nn.sigmoid(h @ params["w2"].T + params["b2"])

    assert out.shape == (BATCH, OUTPUT_SIZE), out.shape
    # bf16 MXU operands / bf16 x with f32 accumulation: ~1e-3 abs error on sigmoid outputs.
    err = float(jnp.max(jnp.abs(out - ref)))
    assert jnp.allclose(out, ref, atol=2e-2, rtol=2e-2), f"max abs err {err}"
    print("KERNEL_OK")
</pallas_src>

<mosaic_0001>
module attributes {stable_mosaic.version = 11 : i64} {
  func.func @cancer_classifier_kernel(%arg0: i32, %arg1: memref<16x256xbf16, #tpu.memory_space<vmem>>, %arg2: memref<128x16xbf16, #tpu.memory_space<vmem>>, %arg3: memref<128x1xf32, #tpu.memory_space<vmem>>, %arg4: memref<8x128xbf16, #tpu.memory_space<vmem>>, %arg5: memref<1xf32, #tpu.memory_space<smem>>, %arg6: memref<1x256xf32, #tpu.memory_space<vmem>>) attributes {dimension_semantics = [#tpu.dimension_semantics<parallel>], iteration_bounds = array<i64: 1>, scalar_prefetch = 0 : i64, scratch_operands = 0 : i64, tpu.core_type = #tpu.core_type<tc>, window_params = [{transform_indices = @transform_0, window_bounds = array<i64: 16, 256>}, {pipeline_mode = #tpu.pipeline_mode<synchronous>, transform_indices = @transform_1, window_bounds = array<i64: 128, 16>}, {pipeline_mode = #tpu.pipeline_mode<synchronous>, transform_indices = @transform_2, window_bounds = array<i64: 128, 1>}, {pipeline_mode = #tpu.pipeline_mode<synchronous>, transform_indices = @transform_3, window_bounds = array<i64: 8, 128>}, {transform_indices = @transform_4, window_bounds = array<i64: 1>}, {transform_indices = @transform_5, window_bounds = array<i64: 1, 256>}]} {
    %c0 = arith.constant 0 : index
    %c0_0 = arith.constant 0 : index
    %0 = vector.load %arg2[%c0, %c0_0] : memref<128x16xbf16, #tpu.memory_space<vmem>>, vector<128x16xbf16>
    %c0_1 = arith.constant 0 : index
    %c0_2 = arith.constant 0 : index
    %1 = vector.load %arg1[%c0_1, %c0_2] : memref<16x256xbf16, #tpu.memory_space<vmem>>, vector<16x256xbf16>
    %cst = arith.constant dense<0.000000e+00> : vector<128x256xf32>
    %2 = tpu.matmul %0, %1, %cst {dimension_numbers = #tpu.dot_dimension_numbers<[1], [0], [0], [1], [0, 0, 1, 1], [], []>} : vector<128x16xbf16>, vector<16x256xbf16>, vector<128x256xf32> -> vector<128x256xf32>
    %c0_3 = arith.constant 0 : index
    %c0_4 = arith.constant 0 : index
    %3 = vector.load %arg3[%c0_3, %c0_4] : memref<128x1xf32, #tpu.memory_space<vmem>>, vector<128x1xf32>
    %4 = vector.broadcast %3 : vector<128x1xf32> to vector<128x256xf32>
    %5 = arith.addf %2, %4 : vector<128x256xf32>
    %cst_5 = arith.constant 0.000000e+00 : f32
    %6 = vector.broadcast %cst_5 : f32 to vector<128x256xf32>
    %7 = arith.maximumf %5, %6 : vector<128x256xf32>
    %c0_6 = arith.constant 0 : index
    %c0_7 = arith.constant 0 : index
    %8 = vector.load %arg4[%c0_6, %c0_7] : memref<8x128xbf16, #tpu.memory_space<vmem>>, vector<8x128xbf16>
    %9 = arith.truncf %7 : vector<128x256xf32> to vector<128x256xbf16>
    %cst_8 = arith.constant dense<0.000000e+00> : vector<8x256xf32>
    %10 = tpu.matmul %8, %9, %cst_8 {dimension_numbers = #tpu.dot_dimension_numbers<[1], [0], [0], [1], [0, 0, 1, 1], [], []>} : vector<8x128xbf16>, vector<128x256xbf16>, vector<8x256xf32> -> vector<8x256xf32>
    %11 = vector.extract_strided_slice %10 {offsets = [0, 0], sizes = [1, 256], strides = [1, 1]} : vector<8x256xf32> to vector<1x256xf32>
    %c0_9 = arith.constant 0 : index
    %12 = memref.load %arg5[%c0_9] : memref<1xf32, #tpu.memory_space<smem>>
    %13 = vector.broadcast %12 : f32 to vector<1x256xf32>
    %14 = arith.addf %11, %13 : vector<1x256xf32>
    %15 = arith.negf %14 : vector<1x256xf32>
    %16 = math.exp %15 : vector<1x256xf32>
    %cst_10 = arith.constant 1.000000e+00 : f32
    %17 = vector.broadcast %cst_10 : f32 to vector<1x256xf32>
    %18 = arith.addf %17, %16 : vector<1x256xf32>
    %19 = arith.divf %17, %18 : vector<1x256xf32>
    %c0_11 = arith.constant 0 : index
    %c0_12 = arith.constant 0 : index
    %20 = vector.load %arg6[%c0_11, %c0_12] : memref<1x256xf32, #tpu.memory_space<vmem>>, vector<1x256xf32>
    tpu.vector_store %arg6[%c0_11, %c0_12], %19 {strides = array<i32>} : memref<1x256xf32, #tpu.memory_space<vmem>>, vector<1x256xf32>,
    return
  }
  func.func @transform_0(%arg0: i32) -> (i32, i32) {
    %c0_i32 = arith.constant 0 : i32
    %c0_i32_0 = arith.constant 0 : i32
    return %c0_i32, %arg0 : i32, i32
  }
  func.func @transform_1(%arg0: i32) -> (i32, i32) {
    %c0_i32 = arith.constant 0 : i32
    %c0_i32_0 = arith.constant 0 : i32
    %c0_i32_1 = arith.constant 0 : i32
    return %c0_i32, %c0_i32_0 : i32, i32
  }
  func.func @transform_2(%arg0: i32) -> (i32, i32) {
    %c0_i32 = arith.constant 0 : i32
    %c0_i32_0 = arith.constant 0 : i32
    %c0_i32_1 = arith.constant 0 : i32
    return %c0_i32, %c0_i32_0 : i32, i32
  }
  func.func @transform_3(%arg0: i32) -> (i32, i32) {
    %c0_i32 = arith.constant 0 : i32
    %c0_i32_0 = arith.constant 0 : i32
    %c0_i32_1 = arith.constant 0 : i32
    return %c0_i32, %c0_i32_0 : i32, i32
  }
  func.func @transform_4(%arg0: i32) -> i32 {
    %c0_i32 = arith.constant 0 : i32
    %c0_i32_0 = arith.constant 0 : i32
    return %c0_i32 : i32
  }
  func.func @transform_5(%arg0: i32) -> (i32, i32) {
    %c0_i32 = arith.constant 0 : i32
    %c0_i32_0 = arith.constant 0 : i32
    return %c0_i32, %arg0 : i32, i32
  }
}

</mosaic_0001>

<bundles_post_ra>
// kernel: cancer_classifier_forward.1
= control target key start
LH: loop header
LB: loop body
LE: loop exit
PB: predicated region body
PF: predicated region fallthrough
CT: control target
= control target key end

     0   :  { %v536_v2 = vmov 0   ;;  %vm187_vm0 = vcmask 130048   ;;  %s673_s0 = inlined_call_operand.vmem [shape: bf16[16,256], index: 0, kind: input, shape index: {}]   ;;  %s674_s1 = inlined_call_operand.vmem [shape: bf16[128,16], index: 1, kind: input, shape index: {}]   ;;  %s675_s2 = inlined_call_operand.vmem [shape: f32[128,1], index: 2, kind: input, shape index: {}]   ;;  %s676_s3 = inlined_call_operand.vmem [shape: bf16[8,128], index: 3, kind: input, shape index: {}]   ;;  %s677_s4 = inlined_call_operand.<no memory space> [shape: f32[1], index: 4, kind: input, shape index: {}]   ;;  %s678_s5 = inlined_call_operand.hbm [shape: f32[1,256], index: 5, kind: output, shape index: {}]  }
   0x1   :  { %v493_v0 = vld [vmem:[%s673_s0 + $0x4] ss:$8 sps:$4 sm:$0xff]   ;;  %v495_v1 = vld [vmem:[%s673_s0] ss:$8 sps:$4 sm:$0xff]   ;;  %244 = vmatprep.mubr.bf16.mxu0 %v536_v2  ;;  %491 = vset.pattern.permute.xlu0 %v536_v2  ;;  %v43_v6 = vld [vmem:[%s675_s2 + $0x10] sm:$0xff] }
   0x2   :  { %212 = vmatprep.subr.bf16.mxu0 %v493_v0  ;;  %v496_v3 = vld [vmem:[%s674_s1] sm:$0xff]   ;;  %492 = vset.pattern.permute.xlu1 %v536_v2  ;;  %v497_v5 = vld [vmem:[%s674_s1 + $0x8] sm:$0xff]   ;;  %v44_v8 = vld [vmem:[%s675_s2 + $0x18] sm:$0xff] }
   0x3   :  { %213 = vmatpush1.bf16.msra.mxu0 %v495_v1  ;;  %406 = vmatprep.mubr.bf16.mxu1 %v536_v2  ;;  %v41_v4 = vld [vmem:[%s675_s2] sm:$0xff]  ;;  %v42_v7 = vld [vmem:[%s675_s2 + $0x8] sm:$0xff] }
   0x4   :  { %59 = vperm.xlu0 %491, %v41_v4   ;;  %69 = vperm.xlu1 %492, %v43_v6  }
   0x6   :  { %478 = vmatmul.mubr.msk.bf16.vlgmr.msra.gmra.mrb[0].mxu0 %vm187_vm0, %v496_v3 }
   0x7   :  { %254 = vmatprep.mubr.bf16.mxu0 %v536_v2 }
   0x8   :  { %64 = vperm.xlu0 %491, %v42_v7  }
   0xe   :  { %479 = vmatmul.mubr.msk.bf16.gmra.mrb[4].mxu0 %vm187_vm0, %v497_v5 }
   0xf   :  { %11 = vsyncpa [#allocation4], 0  ;;  %264 = vmatprep.mubr.bf16.mxu0 %v536_v2  ;;  %74 = vperm.xlu1 %492, %v44_v8   ;;  %v45_v9 = vld [vmem:[%s675_s2 + $0x20] sm:$0xff]  ;;  %v46_v10 = vld [vmem:[%s675_s2 + $0x28] sm:$0xff] }
  0x10   :  { %v498_v11 = vld [vmem:[%s674_s1 + $0x10] sm:$0xff]   ;;  %79 = vperm.xlu0 %491, %v45_v9   ;;  %v48_v13 = vld [vmem:[%s675_s2 + $0x38] sm:$0xff]  ;;  %v49_v14 = vld [vmem:[%s675_s2 + $0x40] sm:$0xff] }
  0x11   :  { %v47_v12 = vld [vmem:[%s675_s2 + $0x30] sm:$0xff]  ;;  %v50_v15 = vld [vmem:[%s675_s2 + $0x48] sm:$0xff]  ;;  %v499_v16 = vld [vmem:[%s674_s1 + $0x18] sm:$0xff]  }
  0x12   :  { %v51_v17 = vld [vmem:[%s675_s2 + $0x50] sm:$0xff]  ;;  %v52_v18 = vld [vmem:[%s675_s2 + $0x58] sm:$0xff]  ;;  %v53_v19 = vld [vmem:[%s675_s2 + $0x60] sm:$0xff] }
  0x13   :  { %84 = vperm.xlu1 %492, %v46_v10   ;;  %v54_v20 = vld [vmem:[%s675_s2 + $0x68] sm:$0xff]  ;;  %v500_v21 = vld [vmem:[%s674_s1 + $0x20] sm:$0xff]   ;;  %v55_v22 = vld [vmem:[%s675_s2 + $0x70] sm:$0xff] }
  0x14   :  { %89 = vperm.xlu0 %491, %v47_v12   ;;  %v56_v23 = vld [vmem:[%s675_s2 + $0x78] sm:$0xff]  ;;  %v501_v24 = vld [vmem:[%s674_s1 + $0x28] sm:$0xff]   ;;  %v502_v25 = vld [vmem:[%s674_s1 + $0x30] sm:$0xff]  }
  0x15   :  { %v503_v26 = vld [vmem:[%s674_s1 + $0x38] sm:$0xff]  }
  0x16   :  { %480 = vmatmul.mubr.msk.bf16.gmra.mrb[8].mxu0 %vm187_vm0, %v498_v11 }
  0x17   :  { %274 = vmatprep.mubr.bf16.mxu0 %v536_v2  ;;  %94 = vperm.xlu1 %492, %v48_v13  }
  0x18   :  { %99 = vperm.xlu0 %491, %v49_v14  }
  0x1b   :  { %104 = vperm.xlu1 %492, %v50_v15  }
  0x1c   :  { %109 = vperm.xlu0 %491, %v51_v17  }
  0x1e   :  { %481 = vmatmul.mubr.msk.bf16.gmra.mrb[12].mxu0 %vm187_vm0, %v499_v16 }
  0x1f   :  { %284 = vmatprep.mubr.bf16.mxu0 %v536_v2  ;;  %114 = vperm.xlu1 %492, %v52_v18  }
  0x20   :  { %119 = vperm.xlu0 %491, %v53_v19  }
  0x23   :  { %124 = vperm.xlu1 %492, %v54_v20  }
  0x24   :  { %129 = vperm.xlu0 %491, %v55_v22  }
  0x26   :  { %482 = vmatmul.mubr.msk.bf16.gmra.mrb[16].mxu0 %vm187_vm0, %v500_v21 }
  0x27   :  { %294 = vmatprep.mubr.bf16.mxu0 %v536_v2  ;;  %134 = vperm.xlu1 %492, %v56_v23  }
  0x2e   :  { %483 = vmatmul.mubr.msk.bf16.gmra.mrb[20].mxu0 %vm187_vm0, %v501_v24 }
  0x2f   :  { %304 = vmatprep.mubr.bf16.mxu0 %v536_v2 }
  0x36   :  { %484 = vmatmul.mubr.msk.bf16.gmra.mrb[24].mxu0 %vm187_vm0, %v502_v25 }
  0x37   :  { %314 = vmatprep.mubr.bf16.mxu0 %v536_v2 }
  0x3e   :  { %485 = vmatmul.mubr.msk.bf16.gmra.mrb[28].mxu0 %vm187_vm0, %v503_v26 }
  0x83   :  { %v60_v27 = vpop.permute.xlu0 %59  ;;  %v70_v36 = vpop.permute.xlu1 %69 }
  0x87   :  { %v65_v29 = vpop.permute.xlu0 %64 }
  0x8e   :  { %v75_v47 = vpop.permute.xlu1 %74 }
  0x8f   :  { %v80_v58 = vpop.permute.xlu0 %79 }
  0x92   :  { %v85_v63 = vpop.permute.xlu1 %84 }
  0x93   :  { %v90_v10 = vpop.permute.xlu0 %89 }
  0x96   :  { %v95_v15 = vpop.permute.xlu1 %94 }
  0x97   :  { %v100_v26 = vpop.permute.xlu0 %99 }
  0xd9   :  { %v246_v28 = vpop.f32.mrb[0].mxu0 }
  0xda   :  { %v247_v30 = vadd.f32 %v246_v28, %v60_v27  ;;  %v248_v31 = vpop.f32.mrb[1].mxu0 }
  0xdb   :  { %v249_v32 = vadd.f32 %v248_v31, %v60_v27  ;;  %v250_v33 = vpop.f32.mrb[2].mxu0  ;;  %v105_v31 = vpop.permute.xlu1 %104 }
  0xdc   :  { %v251_v34 = vadd.f32 %v250_v33, %v65_v29  ;;  %v252_v35 = vpop.f32.mrb[3].mxu0  ;;  %v325_v38 = vmax.f32 %v247_v30, 0.0 }
  0xdd   :  { %v253_v37 = vadd.f32 %v252_v35, %v65_v29  ;;  %v326_v40 = vmax.f32 %v249_v32, 0.0 }
  0xde   :  { %v327_v39 = vmax.f32 %v251_v34, 0.0 }
  0xdf   :  { %v328_v41 = vmax.f32 %v253_v37, 0.0 }
  0xe0   :  { %v358_v42 = vpack.c.bf16 %v327_v39, %v325_v38 }
  0xe1   :  { %v256_v43 = vpop.f32.mrb[4].mxu0  ;;  %v359_v44 = vpack.c.bf16 %v328_v41, %v326_v40 }
  0xe2   :  { %v257_v45 = vadd.f32 %v256_v43, %v70_v36  ;;  %v258_v46 = vpop.f32.mrb[5].mxu0 }
  0xe3   :  { %v259_v48 = vadd.f32 %v258_v46, %v70_v36  ;;  %v260_v49 = vpop.f32.mrb[6].mxu0  ;;  %374 = vmatprep.subr.bf16.mxu1 %v359_v44 }
  0xe4   :  { %v261_v50 = vadd.f32 %v260_v49, %v75_v47  ;;  %v262_v51 = vpop.f32.mrb[7].mxu0  ;;  %375 = vmatpush1.bf16.msra.mxu1 %v358_v42  ;;  %v329_v53 = vmax.f32 %v257_v45, 0.0  ;;  %v110_v42 = vpop.permute.xlu0 %109 }
  0xe5   :  { %v263_v52 = vadd.f32 %v262_v51, %v75_v47  ;;  %v330_v55 = vmax.f32 %v259_v48, 0.0  ;;  %v115_v47 = vpop.permute.xlu1 %114 }
  0xe6   :  { %v331_v54 = vmax.f32 %v261_v50, 0.0 }
  0xe7   :  { %v332_v56 = vmax.f32 %v263_v52, 0.0 }
  0xe8   :  { %v360_v57 = vpack.c.bf16 %v331_v54, %v329_v53 }
  0xe9   :  { %v361_v59 = vpack.c.bf16 %v332_v56, %v330_v55  ;;  %v266_v60 = vpop.f32.mrb[8].mxu0 }
  0xea   :  { %v267_v61 = vadd.f32 %v266_v60, %v80_v58  ;;  %v268_v62 = vpop.f32.mrb[9].mxu0 }
  0xeb   :  { %v269_v0 = vadd.f32 %v268_v62, %v80_v58  ;;  %v270_v1 = vpop.f32.mrb[10].mxu0  ;;  %376 = vmatprep.subr.bf16.mxu1 %v361_v59  ;;  %v120_v58 = vpop.permute.xlu0 %119 }
  0xec   :  { %v271_v2 = vadd.f32 %v270_v1, %v85_v63  ;;  %v272_v3 = vpop.f32.mrb[11].mxu0  ;;  %377 = vmatpush1.bf16.msra.mxu1 %v360_v57  ;;  %v333_v5 = vmax.f32 %v267_v61, 0.0 }
  0xed   :  { %v273_v4 = vadd.f32 %v272_v3, %v85_v63  ;;  %v334_v7 = vmax.f32 %v269_v0, 0.0  ;;  %v125_v63 = vpop.permute.xlu1 %124 }
  0xee   :  { %v335_v6 = vmax.f32 %v271_v2, 0.0 }
  0xef   :  { %v336_v8 = vmax.f32 %v273_v4, 0.0 }
  0xf0   :  { %v362_v9 = vpack.c.bf16 %v335_v6, %v333_v5 }
  0xf1   :  { %v363_v11 = vpack.c.bf16 %v336_v8, %v334_v7  ;;  %v276_v12 = vpop.f32.mrb[12].mxu0 }
  0xf2   :  { %v277_v13 = vadd.f32 %v276_v12, %v90_v10  ;;  %v278_v14 = vpop.f32.mrb[13].mxu0 }
  0xf3   :  { %v279_v16 = vadd.f32 %v278_v14, %v90_v10  ;;  %v280_v17 = vpop.f32.mrb[14].mxu0  ;;  %378 = vmatprep.subr.bf16.mxu1 %v363_v11  ;;  %v130_v10 = vpop.permute.xlu0 %129 }
  0xf4   :  { %v281_v18 = vadd.f32 %v280_v17, %v95_v15  ;;  %v282_v19 = vpop.f32.mrb[15].mxu0  ;;  %379 = vmatpush1.bf16.msra.mxu1 %v362_v9  ;;  %v337_v21 = vmax.f32 %v277_v13, 0.0 }
  0xf5   :  { %v283_v20 = vadd.f32 %v282_v19, %v95_v15  ;;  %v338_v23 = vmax.f32 %v279_v16, 0.0  ;;  %v135_v15 = vpop.permute.xlu1 %134 }
  0xf6   :  { %v339_v22 = vmax.f32 %v281_v18, 0.0 }
  0xf7   :  { %v340_v24 = vmax.f32 %v283_v20, 0.0 }
  0xf8   :  { %v364_v25 = vpack.c.bf16 %v339_v22, %v337_v21 }
  0xf9   :  { %v365_v27 = vpack.c.bf16 %v340_v24, %v338_v23  ;;  %v286_v28 = vpop.f32.mrb[16].mxu0 }
  0xfa   :  { %v287_v29 = vadd.f32 %v286_v28, %v100_v26  ;;  %v288_v30 = vpop.f32.mrb[17].mxu0  ;;  %v416_v28 = vstv %s677_s4 }
  0xfb   :  { %v289_v32 = vadd.f32 %v288_v30, %v100_v26  ;;  %v290_v33 = vpop.f32.mrb[18].mxu0  ;;  %380 = vmatprep.subr.bf16.mxu1 %v365_v27  ;;  %v357_v27 = vld [vmem:[%s676_s3] sm:$0xf]  ;;  %s538_s3 = smov [#allocation3]  }
  0xfc   :  { %v291_v34 = vadd.f32 %v290_v33, %v105_v31  ;;  %v292_v35 = vpop.f32.mrb[19].mxu0  ;;  %381 = vmatpush1.bf16.msra.mxu1 %v364_v25  ;;  %v341_v37 = vmax.f32 %v287_v29, 0.0  ;;  %s460_s4 = sshll.u32 %s538_s3, 4  ;;  %s461_s4 = int_to_ptr.vmem [resolvable:$true] %s460_s4 }
  0xfd   :  { %v293_v36 = vadd.f32 %v292_v35, %v105_v31  ;;  %v342_v39 = vmax.f32 %v289_v32, 0.0  ;;  %s512_s20 = scalar_lea.vmem %s461_s4, 32  ;;  %p517_p1 = scmp.lt.s32.totalorder %s461_s4, %s461_s4 }
  0xfe   :  { %v343_v38 = vmax.f32 %v291_v34, 0.0  ;;  %p513_p0 = scmp.ne.s32.totalorder %s461_s4, %s512_s20  ;;  %p518_p2 = scmp.lt.s32.totalorder %s512_s20, %s512_s20 }
  0xff   :  { %v344_v40 = vmax.f32 %v293_v36, 0.0 }
 0x100   :  { %v366_v41 = vpack.c.bf16 %v343_v38, %v341_v37  ;;  %p519_p3 = por %p518_p2, %p517_p1 }
 0x101   :  { %v367_v43 = vpack.c.bf16 %v344_v40, %v342_v39  ;;  %v296_v44 = vpop.f32.mrb[20].mxu0 }
 0x102   :  { %v297_v45 = vadd.f32 %v296_v44, %v110_v42  ;;  %v298_v46 = vpop.f32.mrb[21].mxu0  ;;  %p520_p4 = pnand %p519_p3, %p513_p0 }
 0x103   :  { %v299_v48 = vadd.f32 %v298_v46, %v110_v42  ;;  %v300_v49 = vpop.f32.mrb[22].mxu0  ;;  %382 = vmatprep.subr.bf16.mxu1 %v367_v43  ;;  %v437_v43 = vlaneseq }
 0x104   :  { %v301_v50 = vadd.f32 %v300_v49, %v115_v47  ;;  %v302_v51 = vpop.f32.mrb[23].mxu0  ;;  %383 = vmatpush1.bf16.msra.mxu1 %v366_v41  ;;  %v345_v53 = vmax.f32 %v297_v45, 0.0  ;;  %v537_v41 = vmov 1966171168  }
 0x105   :  { %v303_v52 = vadd.f32 %v302_v51, %v115_v47  ;;  %v346_v55 = vmax.f32 %v299_v48, 0.0  ;;  %v435_v42 = vunpack.c.l.s4 %v537_v41  ;;  %v438_v45 = vshrl.u32 %v437_v43, 7 }
 0x106   :  { %v347_v54 = vmax.f32 %v301_v50, 0.0  ;;  %vm451_vm1 = vcmp.lt.s32.totalorder %v437_v43, 256 }
 0x107   :  { %v348_v56 = vmax.f32 %v303_v52, 0.0  ;;  %v436_v44 = vunpack.c.0.s8 %v435_v42 }
 0x108   :  { %v368_v57 = vpack.c.bf16 %v347_v54, %v345_v53 }
 0x109   :  { %v369_v59 = vpack.c.bf16 %v348_v56, %v346_v55  ;;  %v306_v60 = vpop.f32.mrb[24].mxu0  ;;  %v439_v47 = vsub.s32 %v436_v44, %v438_v45 }
 0x10a   :  { %v307_v61 = vadd.f32 %v306_v60, %v120_v58  ;;  %v308_v62 = vpop.f32.mrb[25].mxu0 }
 0x10b   :  { %v309_v0 = vadd.f32 %v308_v62, %v120_v58  ;;  %v310_v1 = vpop.f32.mrb[26].mxu0  ;;  %384 = vmatprep.subr.bf16.mxu1 %v369_v59 }
 0x10c   :  { %v311_v2 = vadd.f32 %v310_v1, %v125_v63  ;;  %v312_v3 = vpop.f32.mrb[27].mxu0  ;;  %385 = vmatpush1.bf16.msra.mxu1 %v368_v57  ;;  %v349_v5 = vmax.f32 %v307_v61, 0.0 }
 0x10d   :  { %v313_v4 = vadd.f32 %v312_v3, %v125_v63  ;;  %v350_v7 = vmax.f32 %v309_v0, 0.0 }
 0x10e   :  { %v351_v6 = vmax.f32 %v311_v2, 0.0 }
 0x10f   :  { %v352_v8 = vmax.f32 %v313_v4, 0.0 }
 0x110   :  { %v370_v9 = vpack.c.bf16 %v351_v6, %v349_v5 }
 0x111   :  { %v371_v11 = vpack.c.bf16 %v352_v8, %v350_v7  ;;  %v316_v12 = vpop.f32.mrb[28].mxu0 }
 0x112   :  { %v317_v13 = vadd.f32 %v316_v12, %v130_v10  ;;  %v318_v14 = vpop.f32.mrb[29].mxu0 }
 0x113   :  { %v319_v16 = vadd.f32 %v318_v14, %v130_v10  ;;  %v320_v17 = vpop.f32.mrb[30].mxu0  ;;  %386 = vmatprep.subr.bf16.mxu1 %v371_v11 }
 0x114   :  { %v321_v18 = vadd.f32 %v320_v17, %v135_v15  ;;  %v322_v19 = vpop.f32.mrb[31].mxu0  ;;  %387 = vmatpush1.bf16.msra.mxu1 %v370_v9  ;;  %v353_v21 = vmax.f32 %v317_v13, 0.0 }
 0x115   :  { %v323_v20 = vadd.f32 %v322_v19, %v135_v15  ;;  %v354_v23 = vmax.f32 %v319_v16, 0.0 }
 0x116   :  { %v355_v22 = vmax.f32 %v321_v18, 0.0 }
 0x117   :  { %v356_v24 = vmax.f32 %v323_v20, 0.0 }
 0x118   :  { %v372_v25 = vpack.c.bf16 %v355_v22, %v353_v21 }
 0x119   :  { %v373_v26 = vpack.c.bf16 %v356_v24, %v354_v23 }
 0x11b   :  { %388 = vmatprep.subr.bf16.mxu1 %v373_v26 }
 0x11c   :  { %389 = vmatpush1.bf16.msra.mxu1 %v372_v25 }
 0x11f   :  { %407 = vmatmul.mubr.bf16.vlgmr.msra.gmra.mrb[0].mxu1 %v357_v27 }
 0x1f2   :  { %v408_v29 = vpop.f32.mrb[0].mxu1 }
 0x1f3   :  { %v417_v30 = vadd.f32 %v416_v28, %v408_v29  ;;  %v410_v31 = vpop.f32.mrb[1].mxu1 }
 0x1f4   :  { %v418_v32 = vadd.f32 %v416_v28, %v410_v31  ;;  %v412_v33 = vpop.f32.mrb[2].mxu1 }
 0x1f5   :  { %v486_v34 = vmul.f32 -1.442695, %v417_v30  ;;  %v413_v35 = vpop.f32.mrb[3].mxu1 }
 0x1f6   :  { %v487_v36 = vmul.f32 -1.442695, %v418_v32 }
 0x1f7   :  { %504 = vpow2.f32 %v486_v34 }
 0x1f8   :  { %506 = vpow2.f32 %v487_v36 }
 0x201   :  { %v505_v37 = vpop.eup %504 }
 0x202   :  { %v507_v38 = vpop.eup %506  ;;  %v425_v39 = vadd.f32 1.0, %v505_v37 }
 0x203   :  { %v426_v40 = vadd.f32 1.0, %v507_v38 }
 0x204   :  { %508 = vrcp.f32 %v425_v39 }
 0x205   :  { %510 = vrcp.f32 %v426_v40 }
 0x20e   :  { %v509_v46 = vpop.eup %508 }
 0x20f   :  { %v511_v48 = vpop.eup %510 }
 0x210   :  { %v433_v49 = vcombine.low %v509_v46, %v511_v48 }
 0x212   :  { %v440_v50 = vrot.slane %v433_v49, %v439_v47 }
 0x214   :  { %v447_v51 = vrot.slane %v440_v50, %v439_v47 }
 0x216   :  { %453 = vst.msk [vmem:[#allocation3] sm:$0x3] %vm451_vm1, %v447_v51 }
 0x217   :  { %523 = shalt.err (!%p520_p4)
}
 0x218   :  { %s524_s23 = scalar_lea.hbm %s678_s5, 32 }
 0x219   :  { %p525_p5 = scmp.ne.s32.totalorder %s678_s5, %s524_s23  ;;  %p528_p6 = scmp.lt.u32.totalorder %s524_s23, %s678_s5 }
 0x21b   :  { %p530_p7 = pnand %p528_p6, %p525_p5 }
 0x21d   :  { %533 = shalt.err (!%p530_p7)
}
 0x21e   :  { %463 = dma.vmem_to_hbm [thread:$0]  %s461_s4, 32, %s678_s5, [#allocation4]  }
 0x21f   :  { %534 = dma.done.wait [#allocation4], 32  }
 0x220   :  { %535 = vsyncadd [#allocation4], 4294967264 }
 0x221   :  { %467 = vsyncpa [#allocation4], 1 }

</bundles_post_ra>
